<compile_context>
chip_gen: v7x
topology: tpu7x:2x2x1
jax: 0.10.0
libtpu: 0.0.40
codegen_flags: <defaults>
</compile_context>

<pallas_src>
import functools
import math

import jax
import jax.numpy as jnp
from jax import lax
from jax.experimental import pallas as pl
from jax.experimental.pallas import tpu as pltpu

_HALF_PI = 0.5 * math.pi


def _build_pe_host(d_model: int, max_len: int) -> jnp.ndarray:
    """Reference PE buffer, shape (max_len, 1, d_model) (matches the PyTorch buffer)."""
    position = jnp.arange(max_len, dtype=jnp.float32)[:, None]
    div_term = jnp.exp(
        jnp.arange(0, d_model, 2, dtype=jnp.float32) * (-math.log(10000.0) / d_model)
    )
    angles = position * div_term
    pe = jnp.zeros((max_len, d_model), dtype=jnp.float32)
    pe = pe.at[:, 0::2].set(jnp.sin(angles))
    pe = pe.at[:, 1::2].set(jnp.cos(angles))
    return pe[:, None, :]


def _pos_enc_kernel(x_ref, o_ref, *, d_model: int):
    # x_ref / o_ref: (ts, tl) lane-dense VMEM tiles of the (S, B*D) view of x.
    ts, tl = x_ref.shape
    s0 = pl.program_id(0) * ts          # global starting sequence row of this tile
    l0 = pl.program_id(1) * tl          # global starting flattened lane (= b*D + d)

    # ---- Row-invariant lane math, hoisted to a single (1, tl) row ----
    lane = l0 + lax.broadcasted_iota(jnp.int32, (1, tl), 1)
    odd = lane & 1                                  # == d & 1 (d_model is even)
    d = lane % d_model                              # feature index within d_model
    d_even = (d - odd).astype(jnp.float32)          # 2 * (d // 2)
    inv_freq = jnp.exp(d_even * (-math.log(10000.0) / d_model))    # (1, tl)
    phase = odd.astype(jnp.float32) * _HALF_PI                      # (1, tl)

    # ---- Only `pos` varies per row: a (ts, 1) column ----
    pos = (s0 + lax.broadcasted_iota(jnp.int32, (ts, 1), 0)).astype(jnp.float32)

    # One trig per element: sin(a) for even features, sin(a + pi/2) == cos(a) for odd.
    pe = jnp.sin(pos * inv_freq + phase)            # (ts, tl) via broadcast

    # Eval-mode dropout == identity.
    o_ref[...] = (x_ref[...].astype(jnp.float32) + pe).astype(o_ref.dtype)


def positional_encoding(
    x: jnp.ndarray,
    *,
    max_len: int = 1000,
    donate_x: bool = False,
    tile_s: int | None = None,
) -> jnp.ndarray:
    """x: (S, B, D). Returns x + pe[:S] (eval-mode dropout = identity)."""
    S, B, D = x.shape
    if S > max_len:
        raise ValueError(f"sequence length {S} exceeds max_len {max_len}")
    if D % 2:
        raise ValueError("d_model must be even (as required by the PyTorch module)")

    BD = B * D
    x2 = x.reshape(S, BD)  # contiguous reshape -> lane-dense last axis

    itemsize = jnp.dtype(x.dtype).itemsize
    sub = 8 * max(1, 4 // itemsize)        # sublane multiple: f32 8, bf16 16, int8 32
    target = 4 * 1024 * 1024               # <=4 MiB/block: safe on v5e's 16 MiB scoped
                                           # default, ~85%+ of HBM roofline everywhere.
    lane_bytes = BD * itemsize

    if tile_s is not None:
        # Explicit override (used by tests); keep it layout-legal.
        ts = min(int(tile_s), S)
        if ts < S:
            ts = max(sub, (ts // sub) * sub)
        tl = BD
    elif sub * lane_bytes > target:
        # Very wide rows: also tile the flattened (batch*feature) lane axis so the
        # per-block VMEM footprint stays bounded on every generation.  tl is a
        # multiple of 128 -> unmasked stores; ragged last lane tile is clipped.
        ts = sub
        tl = max(128, (target // (sub * itemsize)) // 128 * 128)
        tl = min(tl, BD)
    else:
        tl = BD
        ts = max(sub, (target // max(lane_bytes, 1)) // sub * sub)
        if ts >= S:
            ts = S
        # Keep >=2 sequence steps when there is real work so v7x's two TensorCores
        # both get grid steps under dimension_semantics=("parallel", ...).
        if ts == S and S > sub and S * lane_bytes > (2 << 20):
            ts = max(sub, pl.cdiv(pl.cdiv(S, 2), sub) * sub)

    grid = (pl.cdiv(S, ts), pl.cdiv(BD, tl))
    block_bytes = ts * tl * itemsize
    # Double-buffered in + out comfortably fits; raise the scoped-VMEM limit
    # explicitly so v5e's 16 MiB default never silently constrains the pipeline.
    vmem_limit = max(32 << 20, 6 * block_bytes)

    out2 = pl.pallas_call(
        functools.partial(_pos_enc_kernel, d_model=D),
        out_shape=jax.ShapeDtypeStruct((S, BD), x.dtype),
        grid=grid,
        in_specs=[pl.BlockSpec((ts, tl), lambda i, j: (i, j))],
        out_specs=pl.BlockSpec((ts, tl), lambda i, j: (i, j)),
        compiler_params=pltpu.CompilerParams(
            dimension_semantics=("parallel", "parallel"),  # megacore sharding on v7x
            vmem_limit_bytes=vmem_limit,
        ),
        # Saves a full activation-size HBM output allocation when the caller can
        # discard x (peak-memory win, biggest on v5e's 16 GiB HBM).
        input_output_aliases=({0: 0} if donate_x else {}),
    )(x2)

    return out2.reshape(S, B, D)


if __name__ == "__main__":
    d_model = 32
    max_len = 1000
    seq_len = 8
    batch = 2

    key = jax.random.PRNGKey(0)
    x = jax.random.normal(key, (seq_len, batch, d_model), dtype=jnp.float32)

    out = jax.block_until_ready(positional_encoding(x, max_len=max_len))

    # Reference check (pure JAX, same construction as the PyTorch buffer;
    # eval-mode dropout == identity).
    pe = _build_pe_host(d_model, max_len)
    ref = x + pe[:seq_len]
    assert out.shape == (seq_len, batch, d_model)
    assert jnp.allclose(out, ref, atol=1e-4, rtol=1e-4), "mismatch vs reference"

    # Ragged-tile check: S not a multiple of the sequence tile (S=20, ts=8).
    key2 = jax.random.PRNGKey(1)
    x_ragged = jax.random.normal(key2, (20, batch, d_model), dtype=jnp.float32)
    out_ragged = jax.block_until_ready(
        positional_encoding(x_ragged, max_len=max_len, tile_s=8)
    )
    ref_ragged = x_ragged + pe[:20]
    assert jnp.allclose(out_ragged, ref_ragged, atol=1e-4, rtol=1e-4), "ragged mismatch"

    print("KERNEL_OK")
</pallas_src>

<mosaic_0001>
module attributes {stable_mosaic.version = 11 : i64} {
  func.func @_pos_enc_kernel(%arg0: i32, %arg1: i32, %arg2: memref<8x64xf32, #tpu.memory_space<vmem>>, %arg3: memref<8x64xf32, #tpu.memory_space<vmem>>) attributes {dimension_semantics = [#tpu.dimension_semantics<parallel>, #tpu.dimension_semantics<parallel>], iteration_bounds = array<i64: 1, 1>, scalar_prefetch = 0 : i64, scratch_operands = 0 : i64, tpu.core_type = #tpu.core_type<tc>, window_params = [{transform_indices = @transform_0, window_bounds = array<i64: 8, 64>}, {transform_indices = @transform_1, window_bounds = array<i64: 8, 64>}]} {
    %c8_i32 = arith.constant 8 : i32
    %0 = arith.muli %arg0, %c8_i32 : i32
    %c64_i32 = arith.constant 64 : i32
    %1 = arith.muli %arg1, %c64_i32 : i32
    %2 = tpu.iota {dimensions = array<i32: 1>} : vector<1x64xi32>
    %3 = vector.broadcast %1 : i32 to vector<1x64xi32>
    %4 = arith.addi %3, %2 : vector<1x64xi32>
    %c1_i32 = arith.constant 1 : i32
    %5 = vector.broadcast %c1_i32 : i32 to vector<1x64xi32>
    %6 = arith.andi %4, %5 : vector<1x64xi32>
    %c32_i32 = arith.constant 32 : i32
    %c0_i32 = arith.constant 0 : i32
    %7 = arith.cmpi eq, %c32_i32, %c0_i32 : i32
    %c1_i32_0 = arith.constant 1 : i32
    %8 = arith.select %7, %c1_i32_0, %c32_i32 : i32
    %9 = vector.broadcast %8 : i32 to vector<1x64xi32>
    %10 = arith.remsi %4, %9 : vector<1x64xi32>
    %c0_i32_1 = arith.constant 0 : i32
    %11 = vector.broadcast %c0_i32_1 : i32 to vector<1x64xi32>
    %12 = arith.cmpi ne, %10, %11 : vector<1x64xi32>
    %c0_i32_2 = arith.constant 0 : i32
    %13 = vector.broadcast %c0_i32_2 : i32 to vector<1x64xi32>
    %14 = arith.cmpi slt, %10, %13 : vector<1x64xi32>
    %c0_i32_3 = arith.constant 0 : i32
    %15 = arith.cmpi slt, %8, %c0_i32_3 : i32
    %16 = vector.broadcast %15 : i1 to vector<1x64xi1>
    %17 = vector.broadcast %16 : vector<1x64xi1> to vector<1x64xi1>
    %18 = arith.xori %14, %17 : vector<1x64xi1>
    %19 = arith.andi %18, %12 : vector<1x64xi1>
    %20 = vector.broadcast %8 : i32 to vector<1x64xi32>
    %21 = arith.addi %10, %20 : vector<1x64xi32>
    %22 = arith.select %19, %21, %10 : vector<1x64xi1>, vector<1x64xi32>
    %23 = arith.subi %22, %6 : vector<1x64xi32>
    %24 = arith.sitofp %23 : vector<1x64xi32> to vector<1x64xf32>
    %cst = arith.constant -0.287823141 : f32
    %25 = vector.broadcast %cst : f32 to vector<1x64xf32>
    %26 = arith.mulf %24, %25 : vector<1x64xf32>
    %27 = math.exp %26 : vector<1x64xf32>
    %28 = arith.sitofp %6 : vector<1x64xi32> to vector<1x64xf32>
    %cst_4 = arith.constant 1.57079637 : f32
    %29 = vector.broadcast %cst_4 : f32 to vector<1x64xf32>
    %30 = arith.mulf %28, %29 : vector<1x64xf32>
    %31 = tpu.iota {dimensions = array<i32: 0>} : vector<8x1xi32>
    %32 = vector.broadcast %0 : i32 to vector<8x1xi32>
    %33 = arith.addi %32, %31 : vector<8x1xi32>
    %34 = arith.sitofp %33 : vector<8x1xi32> to vector<8x1xf32>
    %35 = vector.broadcast %34 : vector<8x1xf32> to vector<8x64xf32>
    %36 = vector.broadcast %27 : vector<1x64xf32> to vector<8x64xf32>
    %37 = arith.mulf %35, %36 : vector<8x64xf32>
    %38 = vector.broadcast %30 : vector<1x64xf32> to vector<8x64xf32>
    %39 = arith.addf %37, %38 : vector<8x64xf32>
    %40 = math.sin %39 : vector<8x64xf32>
    %c0 = arith.constant 0 : index
    %c0_5 = arith.constant 0 : index
    %41 = vector.load %arg2[%c0, %c0_5] : memref<8x64xf32, #tpu.memory_space<vmem>>, vector<8x64xf32>
    %42 = arith.addf %41, %40 : vector<8x64xf32>
    %c0_6 = arith.constant 0 : index
    %c0_7 = arith.constant 0 : index
    %43 = vector.load %arg3[%c0_6, %c0_7] : memref<8x64xf32, #tpu.memory_space<vmem>>, vector<8x64xf32>
    tpu.vector_store %arg3[%c0_6, %c0_7], %42 {strides = array<i32>} : memref<8x64xf32, #tpu.memory_space<vmem>>, vector<8x64xf32>,
    return
  }
  func.func @transform_0(%arg0: i32, %arg1: i32) -> (i32, i32) {
    %c0_i32 = arith.constant 0 : i32
    return %arg0, %arg1 : i32, i32
  }
  func.func @transform_1(%arg0: i32, %arg1: i32) -> (i32, i32) {
    %c0_i32 = arith.constant 0 : i32
    return %arg0, %arg1 : i32, i32
  }
}

</mosaic_0001>

<bundles_post_ra>
// kernel: tpu_custom_call.1
= control target key start
LH: loop header
LB: loop body
LE: loop exit
PB: predicated region body
PF: predicated region fallthrough
CT: control target
= control target key end

     0   :  { %6 = vsyncpa [#allocation3], 0  ;;  %s310_s0 = inlined_call_operand.hbm [shape: f32[8,64], index: 0, kind: input, shape index: {}]   ;;  %s311_s1 = inlined_call_operand.hbm [shape: f32[8,64], index: 1, kind: output, shape index: {}]  }
   0x1   :  { %7 = vsyncpa [#allocation4], 0  ;;  %s247_s6 = smov [#allocation2]   ;;  %s199_s10 = scalar_lea.hbm %s310_s0, 128 }
   0x2   :  { %s14_s7 = sshll.u32 %s247_s6, 4  ;;  %p200_p0 = scmp.ne.s32.totalorder %s310_s0, %s199_s10  ;;  %s15_s7 = int_to_ptr.vmem [resolvable:$true] %s14_s7 }
   0x3   :  { %p203_p1 = scmp.lt.u32.totalorder %s199_s10, %s310_s0 }
   0x5   :  { %p205_p2 = pnand %p203_p1, %p200_p0 }
   0x7   :  { %208 = shalt.err (!%p205_p2)
}
   0x8   :  { %s209_s15 = scalar_lea.vmem %s15_s7, 128  ;;  %p214_p4 = scmp.lt.s32.totalorder %s15_s7, %s15_s7 }
   0x9   :  { %p210_p3 = scmp.ne.s32.totalorder %s15_s7, %s209_s15  ;;  %p215_p5 = scmp.lt.s32.totalorder %s209_s15, %s209_s15 }
   0xb   :  { %p216_p6 = por %p215_p5, %p214_p4 }
   0xd   :  { %p217_p7 = pnand %p216_p6, %p210_p3 }
   0xf   :  { %220 = shalt.err (!%p217_p7)
}
  0x10   :  { %17 = dma.hbm_to_vmem [thread:$0]  %s310_s0, 128, %s15_s7, [#allocation3]  }
  0x11   :  { %243 = dma.done.wait [#allocation3], 128  }
  0x12   :  { %244 = vsyncadd [#allocation3], 4294967168  ;;  %v23_v0 = vlaneseq  ;;  %v248_v26 = vmov 683565275   ;;  %v249_v28 = vmov 2475754826  }
  0x13   :  { %v250_v30 = vmov 2131351028   ;;  %v251_v32 = vmov 2102212464   ;;  %v252_v34 = vmov 920167782  }
  0x14   :  { %v24_v1 = vand.u32 127, %v23_v0  ;;  %v48_v8 = vshrl.u32 %v23_v0, 7  ;;  %v253_v41 = vmov 1326507024   ;;  %s254_s0 = smov [#allocation5]   ;;  %vm160_vm13 = vcmask 523264  }
  0x15   :  { %s168_s18 = sshll.u32 %s254_s0, 4  ;;  %s169_s18 = int_to_ptr.vmem [resolvable:$true] %s168_s18 }
  0x16   :  { %v27_v2 = vand.u32 1, %v24_v1  ;;  %v32_v3 = vand.u32 31, %v24_v1  ;;  %v51_v10 = vcvt.s32.f32 %v48_v8  ;;  %s221_s19 = scalar_lea.vmem %s169_s18, 128  ;;  %p226_p9 = scmp.lt.s32.totalorder %s169_s18, %s169_s18 }
  0x17   :  { %p222_p8 = scmp.ne.s32.totalorder %s169_s18, %s221_s19  ;;  %p227_p10 = scmp.lt.s32.totalorder %s221_s19, %s221_s19 }
  0x18   :  { %v40_v4 = vsub.s32 %v32_v3, %v27_v2  ;;  %v45_v9 = vcvt.s32.f32 %v27_v2 }
  0x19   :  { %p228_p11 = por %p227_p10, %p226_p9 }
  0x1a   :  { %v41_v5 = vcvt.s32.f32 %v40_v4  ;;  %v46_v11 = vmul.f32 1.5707964, %v45_v9 }
  0x1b   :  { %p229_p12 = pnand %p228_p11, %p222_p8 }
  0x1c   :  { %v42_v6 = vmul.f32 -0.28782314, %v41_v5 }
  0x1e   :  { %v43_v7 = vmul.f32 1.442695, %v42_v6 }
  0x20   :  { %193 = vpow2.f32 %v43_v7 }
  0x2a   :  { %v194_v12 = vpop.eup %193 }
  0x2b   :  { %v52_v13 = vmul.f32 %v194_v12, %v51_v10 }
  0x2d   :  { %v277_v14 = vadd.f32 %v52_v13, %v46_v11 }
  0x2f   :  { %v57_v15 = vand.u32 2139095040, %v277_v14  ;;  %v54_v17 = vand.u32 2147483647, %v277_v14  ;;  %vm56_vm7 = vcmp.lt.s32.totalorder %v277_v14, 0  ;;  %vm146_vm12 = vweird.f32 %v277_v14 }
  0x31   :  { %v58_v16 = vshrl.u32 %v57_v15, 23  ;;  %v61_v20 = vand.u32 8388607, %v54_v17  ;;  %vm55_vm8 = vcmp.le.f32.partialorder %v54_v17, 0.7853982 }
  0x33   :  { %v177_v18 = vadd.s32 4294967169, %v58_v16  ;;  %v62_v23 = vor.u32 8388608, %v61_v20 }
  0x35   :  { %v64_v19 = vadd.s32 1, %v177_v18  ;;  %v102_v43 = vshll.u32 %v62_v23, 8 }
  0x37   :  { %vm65_vm0 = vcmp.gt.s32.totalorder %v64_v19, 0 }
  0x38   :  { %v66_v21 = vsel %vm65_vm0, %v64_v19, 0 }
  0x39   :  { %v68_v22 = vand.u32 31, %v66_v21  ;;  %v67_v24 = vshrl.u32 %v66_v21, 5 }
  0x3b   :  { %v69_v25 = vsub.s32 32, %v68_v22  ;;  %v71_v27 = vshll.u32 %v248_v26, %v68_v22  ;;  %v74_v29 = vshll.u32 %v249_v28, %v68_v22  ;;  %v77_v31 = vshll.u32 %v250_v30, %v68_v22 }
  0x3c   :  { %v80_v33 = vshll.u32 %v251_v32, %v68_v22  ;;  %v83_v35 = vshll.u32 %v252_v34, %v68_v22  ;;  %vm86_vm1 = vcmp.lt.s32.totalorder %v67_v24, 1  ;;  %vm89_vm2 = vcmp.lt.s32.totalorder %v67_v24, 4 }
  0x3d   :  { %v70_v36 = vshrl.u32 %v248_v26, %v69_v25  ;;  %v72_v37 = vshrl.u32 %v249_v28, %v69_v25  ;;  %v75_v38 = vshrl.u32 %v250_v30, %v69_v25  ;;  %v78_v39 = vshrl.u32 %v251_v32, %v69_v25 }
  0x3e   :  { %v81_v40 = vshrl.u32 %v252_v34, %v69_v25  ;;  %v84_v42 = vshrl.u32 %v253_v41, %v69_v25  ;;  %vm87_vm3 = vcmp.lt.s32.totalorder %v67_v24, 2  ;;  %vm88_vm4 = vcmp.lt.s32.totalorder %v67_v24, 3  ;;  %v158_v41 = vld [vmem:[#allocation2] sm:$0xff] }
  0x3f   :  { %v73_v44 = vor.u32 %v72_v37, %v71_v27  ;;  %v76_v45 = vor.u32 %v75_v38, %v74_v29  ;;  %v79_v46 = vor.u32 %v78_v39, %v77_v31 }
  0x40   :  { %v82_v47 = vor.u32 %v81_v40, %v80_v33  ;;  %v85_v48 = vor.u32 %v84_v42, %v83_v35 }
  0x41   :  { %v90_v49 = vsel %vm86_vm1, %v70_v36, %v73_v44  ;;  %v91_v50 = vsel %vm89_vm2, %v79_v46, 2102212464  ;;  %v94_v51 = vsel %vm86_vm1, %v73_v44, %v76_v45  ;;  %v98_v52 = vsel %vm86_vm1, %v76_v45, %v79_v46 }
  0x42   :  { %v92_v53 = vsel %vm88_vm4, %v76_v45, %v91_v50  ;;  %v95_v54 = vsel %vm89_vm2, %v82_v47, 920167782  ;;  %v99_v55 = vsel %vm89_vm2, %v85_v48, 1326507024 }
  0x43   :  { %v96_v56 = vsel %vm88_vm4, %v79_v46, %v95_v54  ;;  %v100_v57 = vsel %vm88_vm4, %v82_v47, %v99_v55  ;;  %v93_v58 = vsel %vm87_vm3, %v90_v49, %v92_v53 }
  0x44   :  { %v97_v59 = vsel %vm87_vm3, %v94_v51, %v96_v56  ;;  %v101_v60 = vsel %vm87_vm3, %v98_v52, %v100_v57  ;;  %v109_v1 = vmul.u32 %v102_v43, %v93_v58 }
  0x45   :  { %v283_v61 = vmul.u32.u64.low %v102_v43, %v101_v60  ;;  %v284_v62 = vmul.u32.u64.high %v102_v43, %v101_v60, %v283_v61  ;;  %v286_v63 = vmul.u32.u64.low %v102_v43, %v97_v59  ;;  %v287_v0 = vmul.u32.u64.high %v102_v43, %v97_v59, %v286_v63 }
  0x47   :  { %vm111_vm5 = vc.u32 %v284_v62, %v286_v63  ;;  %v112_v2 = vadd.s32 1, %v287_v0  ;;  %v110_v13 = vadd.s32 %v286_v63, %v284_v62 }
  0x49   :  { %v113_v3 = vsel %vm111_vm5, %v112_v2, %v287_v0 }
  0x4a   :  { %v114_v4 = vadd.s32 %v113_v3, %v109_v1 }
  0x4c   :  { %v115_v5 = vadd.s32 536870912, %v114_v4 }
  0x4e   :  { %v116_v6 = vshrl.u32 %v115_v5, 30 }
  0x50   :  { %v117_v7 = vshll.u32 %v116_v6, 30  ;;  %v140_v27 = vsub.s32 4, %v116_v6 }
  0x52   :  { %v118_v8 = vsub.s32 %v114_v4, %v117_v7  ;;  %v141_v30 = vsel %vm56_vm7, %v140_v27, %v116_v6 }
  0x53   :  { %v143_v33 = vsel %vm55_vm8, 0, %v141_v30 }
  0x54   :  { %v120_v9 = vsub.s32 0, %v118_v8  ;;  %v147_v34 = vadd.s32 3, %v143_v33 }
  0x56   :  { %v178_v10 = vmin.u32 %v120_v9, %v118_v8  ;;  %v148_v35 = vand.u32 3, %v147_v34 }
  0x58   :  { %v122_v11 = vclz %v178_v10  ;;  %vm153_vm9 = vcmp.eq.s32.totalorder %v148_v35, 2  ;;  %vm150_vm10 = vcmp.eq.s32.totalorder %v148_v35, 0  ;;  %vm149_vm11 = vcmp.lt.s32.totalorder %v148_v35, 2 }
  0x5a   :  { %v179_v12 = vadd.s32 4294967294, %v122_v11 }
  0x5c   :  { %vm180_vm6 = vcmp.lt.s32.totalorder %v179_v12, 0 }
  0x5d   :  { %v125_v15 = vsel %vm180_vm6, 0, %v179_v12 }
  0x5e   :  { %v126_v16 = vsub.s32 32, %v125_v15  ;;  %v127_v18 = vshll.u32 %v118_v8, %v125_v15  ;;  %v130_v19 = vsub.s32 4294967266, %v125_v15 }
  0x60   :  { %v128_v20 = vshrl.u32 %v110_v13, %v126_v16  ;;  %v131_v21 = vadd.s32 127, %v130_v19 }
  0x62   :  { %v129_v22 = vor.u32 %v128_v20, %v127_v18  ;;  %v132_v23 = vshll.u32 %v131_v21, 23 }
  0x64   :  { %v133_v24 = vor.u32 4788187, %v132_v23  ;;  %v136_v25 = vcvt.s32.f32 %v129_v22 }
  0x66   :  { %v134_v26 = vand.u32 2147483647, %v133_v24 }
  0x68   :  { %v137_v28 = vmul.f32 %v136_v25, %v134_v26 }
  0x6a   :  { %v138_v29 = vxor.u32 2147483648, %v137_v28 }
  0x6c   :  { %v139_v31 = vsel %vm56_vm7, %v138_v29, %v137_v28 }
  0x6d   :  { %v142_v32 = vsel %vm55_vm8, %v277_v14, %v139_v31 }
  0x6e   :  { %195 = vcosq.f32 %v142_v32 }
  0x6f   :  { %197 = vsinq.f32 %v142_v32 }
  0x78   :  { %v196_v36 = vpop.eup %195 }
  0x79   :  { %v198_v37 = vpop.eup %197  ;;  %v154_v38 = vxor.u32 2147483648, %v196_v36 }
  0x7a   :  { %v151_v39 = vxor.u32 2147483648, %v198_v37 }
  0x7b   :  { %v155_v17 = vsel %vm153_vm9, %v154_v38, %v198_v37 }
  0x7c   :  { %v152_v40 = vsel %vm150_vm10, %v196_v36, %v151_v39 }
  0x7d   :  { %v156_v42 = vsel %vm149_vm11, %v152_v40, %v155_v17 }
  0x7e   :  { %v157_v43 = vsel %vm146_vm12, nan, %v156_v42 }
  0x7f   :  { %v159_v44 = vadd.f32 %v158_v41, %v157_v43 }
  0x81   :  { %161 = vst.msk [vmem:[#allocation5] sm:$0xff] %vm160_vm13, %v159_v44 }
  0x82   :  { %232 = shalt.err (!%p229_p12)
}
  0x83   :  { %s233_s22 = scalar_lea.hbm %s311_s1, 128 }
  0x84   :  { %p234_p13 = scmp.ne.s32.totalorder %s311_s1, %s233_s22  ;;  %p237_p0 = scmp.lt.u32.totalorder %s233_s22, %s311_s1 }
  0x86   :  { %p239_p1 = pnand %p237_p0, %p234_p13 }
  0x88   :  { %242 = shalt.err (!%p239_p1)
}
  0x89   :  { %171 = dma.vmem_to_hbm [thread:$0]  %s169_s18, 128, %s311_s1, [#allocation4]  }
  0x8a   :  { %245 = dma.done.wait [#allocation4], 128  }
  0x8b   :  { %246 = vsyncadd [#allocation4], 4294967168 }
  0x8c   :  { %175 = vsyncpa [#allocation3], 1 }
  0x8d   :  { %176 = vsyncpa [#allocation4], 1 }

</bundles_post_ra>
